<compile_context>
chip_gen: v6e
topology: v6e:2x2x1
jax: 0.10.0
libtpu: 0.0.40
codegen_flags: <defaults>
</compile_context>

<pallas_src>
import jax
import jax.numpy as jnp
from jax.experimental import pallas as pl
from jax.experimental.pallas import tpu as pltpu


def _round_up(x, m):
    return ((x + m - 1) // m) * m


def _mlp_kernel(x_ref, w1_ref, b1_ref, w2_ref, b2_ref, o_ref):
    # fc1 on the MXU with f32 accumulation; bias add + ReLU stay f32 on the VPU
    # (v5e has no bf16 VPU/EUP path -- keep the epilogue f32 on all generations).
    h = jnp.dot(x_ref[...], w1_ref[...], preferred_element_type=jnp.float32)
    h = jnp.maximum(h + b1_ref[...], 0.0)                      # (TB, H_pad)
    # fc2 on the MXU: cast the activation to the weights' compute dtype only for
    # the MXU operands; accumulation is still f32.  Padded H/O rows/cols are zero.
    out = jnp.dot(h.astype(w2_ref.dtype), w2_ref[...],
                  preferred_element_type=jnp.float32)          # (TB, O_pad)
    out = out + b2_ref[...]
    n_out = o_ref.shape[1]
    # Store only the real output columns -- the HBM write is B*O bytes, not B*128*4.
    o_ref[...] = out[:, :n_out].astype(o_ref.dtype)


def prepare_params(w1, b1, w2, b2, *, compute_dtype=jnp.float32):
    """One-time padding / casting of the two Linear layers (hoisted out of the
    per-call path so the padded F x H_pad / H_pad x O_pad arrays are not
    re-materialised in HBM on every forward call).

    w1: (input_dim, hidden)  == torch fc1.weight.T
    b1: (1, hidden) or (hidden,)
    w2: (hidden, output_dim) == torch fc2.weight.T
    b2: (1, output_dim) or (output_dim,)
    """
    cdt = jnp.dtype(compute_dtype)
    F, H = w1.shape
    O = w2.shape[1]
    H_pad = _round_up(H, 128)
    O_pad = _round_up(O, 128)

    w1p = jnp.zeros((F, H_pad), cdt).at[:, :H].set(w1.astype(cdt))
    b1p = jnp.zeros((1, H_pad), jnp.float32).at[:, :H].set(
        jnp.reshape(b1, (1, H)).astype(jnp.float32))
    w2p = jnp.zeros((H_pad, O_pad), cdt).at[:H, :O].set(w2.astype(cdt))
    b2p = jnp.zeros((1, O_pad), jnp.float32).at[:, :O].set(
        jnp.reshape(b2, (1, O)).astype(jnp.float32))

    return {"w1": w1p, "b1": b1p, "w2": w2p, "b2": b2p,
            "dims": (int(F), int(H), int(O)), "compute_dtype": cdt}


def tabular_mlp_forward(x, params, *, block_batch=8192, out_dtype=jnp.float32):
    """Pallas forward pass matching nn.Sequential(Linear, ReLU, Linear).

    x      : (B, input_dim)
    params : output of prepare_params()
    returns (B, output_dim) in out_dtype (default float32)
    """
    F, H, O = params["dims"]
    cdt = params["compute_dtype"]
    odt = jnp.dtype(out_dtype)
    w1p, b1p, w2p, b2p = params["w1"], params["b1"], params["w2"], params["b2"]
    H_pad = w1p.shape[1]
    O_pad = w2p.shape[1]

    B = x.shape[0]
    assert x.shape[1] == F

    # ---- per-generation VMEM budget (v7x: 64 MiB; v5e/v6e: 128 MiB) ----
    try:
        vmem_capacity = int(pltpu.get_tpu_info().vmem_capacity_bytes)
    except Exception:
        vmem_capacity = 128 * 2**20
    vmem_budget = min(vmem_capacity // 2, 48 * 2**20)

    # Per-row VMEM cost of one batch tile.  Narrow blocks (F, O < 128) are still
    # lane-padded to 128 inside VMEM, so account for that (HBM traffic is not).
    F_lane = _round_up(F, 128)
    O_lane = _round_up(O, 128)
    per_row = (2 * F_lane * cdt.itemsize          # x tile, double-buffered
               + 2 * O_lane * odt.itemsize        # out tile, double-buffered
               + H_pad * 4                        # hidden activation (f32)
               + H_pad * cdt.itemsize             # its compute-dtype cast copy
               + O_pad * 4)                       # pre-slice fc2 result (f32)
    weights_bytes = 2 * ((F * H_pad + H_pad * O_pad) * cdt.itemsize
                         + (H_pad + O_pad) * 4)
    avail = max(vmem_budget - weights_bytes - (2 << 20), 1 << 20)
    tb_vmem = max(16, (avail // per_row) // 16 * 16)

    # Keep >= 2 batch tiles when B is moderate so v7x's two TensorCores both get
    # work (harmless on single-TC v5e/v6e).
    two_tile_cap = max(16, _round_up((B + 1) // 2, 16))
    TB = max(16, min(_round_up(block_batch, 16), tb_vmem, two_tile_cap))
    B_pad = _round_up(B, TB)

    xp = x.astype(cdt)
    if B_pad != B:
        xp = jnp.pad(xp, ((0, B_pad - B), (0, 0)))

    grid = (B_pad // TB,)

    vmem_est = TB * per_row + weights_bytes
    vmem_limit = int(min(max(2 * vmem_est, 16 * 2**20), vmem_capacity * 3 // 4))

    # True (unpadded) FLOPs / bytes -- advisory only, but keep it honest.
    cost = pl.CostEstimate(
        flops=2 * B * (F * H + H * O),
        transcendentals=0,
        bytes_accessed=(B * F * cdt.itemsize                 # stream x in
                        + B * O * odt.itemsize                # stream real outputs
                        + (F * H_pad + H_pad * O_pad) * cdt.itemsize
                        + (H_pad + O_pad) * 4),               # weights/biases once
    )

    out = pl.pallas_call(
        _mlp_kernel,
        out_shape=jax.ShapeDtypeStruct((B_pad, O), odt),
        grid_spec=pltpu.PrefetchScalarGridSpec(
            num_scalar_prefetch=0,
            grid=grid,
            in_specs=[
                pl.BlockSpec((TB, F), lambda i: (i, 0)),         # x: streamed
                pl.BlockSpec((F, H_pad), lambda i: (0, 0)),      # w1: resident
                pl.BlockSpec((1, H_pad), lambda i: (0, 0)),      # b1: resident
                pl.BlockSpec((H_pad, O_pad), lambda i: (0, 0)),  # w2: resident
                pl.BlockSpec((1, O_pad), lambda i: (0, 0)),      # b2: resident
            ],
            # Lane-dense in the sense that only real columns hit HBM: block last
            # dim equals the full (unpadded) output dim, so the writeback DMA
            # moves B*O elements instead of B*128.
            out_specs=pl.BlockSpec((TB, O), lambda i: (i, 0)),
        ),
        compiler_params=pltpu.CompilerParams(
            dimension_semantics=("parallel",),
            vmem_limit_bytes=vmem_limit,
        ),
        cost_estimate=cost,
    )(xp, w1p, b1p, w2p, b2p)

    return out[:B]


def init_params(key, input_dim, hidden_dim=16, output_dim=1):
    """Deterministic PyTorch-style (Kaiming-uniform-ish) init for the two Linear layers."""
    k1, k2, k3, k4 = jax.random.split(key, 4)
    bound1 = 1.0 / jnp.sqrt(input_dim)
    bound2 = 1.0 / jnp.sqrt(hidden_dim)
    w1 = jax.random.uniform(k1, (input_dim, hidden_dim), jnp.float32, -bound1, bound1)
    b1 = jax.random.uniform(k2, (1, hidden_dim), jnp.float32, -bound1, bound1)
    w2 = jax.random.uniform(k3, (hidden_dim, output_dim), jnp.float32, -bound2, bound2)
    b2 = jax.random.uniform(k4, (1, output_dim), jnp.float32, -bound2, bound2)
    return w1, b1, w2, b2


if __name__ == "__main__":
    key = jax.random.PRNGKey(0)
    input_dim, hidden_dim, output_dim = 32, 16, 1

    kx, kx2, kp = jax.random.split(key, 3)
    w1, b1, w2, b2 = init_params(kp, input_dim, hidden_dim, output_dim)

    # --- Test 1: small batch, f32 compute (tight tolerance) ---
    x = jax.random.normal(kx, (8, input_dim), jnp.float32)
    ref = jnp.maximum(x @ w1 + b1, 0.0) @ w2 + b2

    params_f32 = prepare_params(w1, b1, w2, b2, compute_dtype=jnp.float32)
    out = jax.block_until_ready(tabular_mlp_forward(x, params_f32))
    assert out.shape == (8, output_dim)
    assert jnp.allclose(out, ref, atol=1e-5, rtol=1e-5)

    # --- Test 2: batch that needs padding and a multi-tile grid, f32 ---
    x2 = jax.random.normal(kx2, (300, input_dim), jnp.float32)
    ref2 = jnp.maximum(x2 @ w1 + b1, 0.0) @ w2 + b2
    out2 = jax.block_until_ready(tabular_mlp_forward(x2, params_f32))
    assert out2.shape == (300, output_dim)
    assert jnp.allclose(out2, ref2, atol=1e-5, rtol=1e-5)

    # --- Test 3: bf16 compute path (f32 accumulation -> loose tolerance) ---
    params_bf16 = prepare_params(w1, b1, w2, b2, compute_dtype=jnp.bfloat16)
    out_bf16 = jax.block_until_ready(tabular_mlp_forward(x, params_bf16))
    assert out_bf16.shape == (8, output_dim)
    assert jnp.allclose(out_bf16, ref, atol=5e-2, rtol=5e-2)

    print("KERNEL_OK")
</pallas_src>

<mosaic_0001>
module attributes {stable_mosaic.version = 11 : i64} {
  func.func @_mlp_kernel(%arg0: i32, %arg1: memref<16x32xf32, #tpu.memory_space<vmem>>, %arg2: memref<32x128xf32, #tpu.memory_space<vmem>>, %arg3: memref<1x128xf32, #tpu.memory_space<vmem>>, %arg4: memref<128x128xf32, #tpu.memory_space<vmem>>, %arg5: memref<1x128xf32, #tpu.memory_space<vmem>>, %arg6: memref<16x1xf32, #tpu.memory_space<vmem>>) attributes {dimension_semantics = [#tpu.dimension_semantics<parallel>], iteration_bounds = array<i64: 1>, scalar_prefetch = 0 : i64, scratch_operands = 0 : i64, tpu.core_type = #tpu.core_type<tc>, window_params = [{transform_indices = @transform_0, window_bounds = array<i64: 16, 32>}, {pipeline_mode = #tpu.pipeline_mode<synchronous>, transform_indices = @transform_1, window_bounds = array<i64: 32, 128>}, {pipeline_mode = #tpu.pipeline_mode<synchronous>, transform_indices = @transform_2, window_bounds = array<i64: 1, 128>}, {pipeline_mode = #tpu.pipeline_mode<synchronous>, transform_indices = @transform_3, window_bounds = array<i64: 128, 128>}, {pipeline_mode = #tpu.pipeline_mode<synchronous>, transform_indices = @transform_4, window_bounds = array<i64: 1, 128>}, {transform_indices = @transform_5, window_bounds = array<i64: 16, 1>}]} {
    %c0 = arith.constant 0 : index
    %c0_0 = arith.constant 0 : index
    %0 = vector.load %arg1[%c0, %c0_0] : memref<16x32xf32, #tpu.memory_space<vmem>>, vector<16x32xf32>
    %c0_1 = arith.constant 0 : index
    %c0_2 = arith.constant 0 : index
    %1 = vector.load %arg2[%c0_1, %c0_2] : memref<32x128xf32, #tpu.memory_space<vmem>>, vector<32x128xf32>
    %cst = arith.constant dense<0.000000e+00> : vector<16x128xf32>
    %2 = tpu.matmul %0, %1, %cst {dimension_numbers = #tpu.dot_dimension_numbers<[1], [0], [0], [1], [0, 0, 1, 1], [], []>} : vector<16x32xf32>, vector<32x128xf32>, vector<16x128xf32> -> vector<16x128xf32>
    %c0_3 = arith.constant 0 : index
    %c0_4 = arith.constant 0 : index
    %3 = vector.load %arg3[%c0_3, %c0_4] : memref<1x128xf32, #tpu.memory_space<vmem>>, vector<1x128xf32>
    %4 = vector.broadcast %3 : vector<1x128xf32> to vector<16x128xf32>
    %5 = arith.addf %2, %4 : vector<16x128xf32>
    %cst_5 = arith.constant 0.000000e+00 : f32
    %6 = vector.broadcast %cst_5 : f32 to vector<16x128xf32>
    %7 = arith.maximumf %5, %6 : vector<16x128xf32>
    %c0_6 = arith.constant 0 : index
    %c0_7 = arith.constant 0 : index
    %8 = vector.load %arg4[%c0_6, %c0_7] : memref<128x128xf32, #tpu.memory_space<vmem>>, vector<128x128xf32>
    %cst_8 = arith.constant dense<0.000000e+00> : vector<16x128xf32>
    %9 = tpu.matmul %7, %8, %cst_8 {dimension_numbers = #tpu.dot_dimension_numbers<[1], [0], [0], [1], [0, 0, 1, 1], [], []>} : vector<16x128xf32>, vector<128x128xf32>, vector<16x128xf32> -> vector<16x128xf32>
    %c0_9 = arith.constant 0 : index
    %c0_10 = arith.constant 0 : index
    %10 = vector.load %arg5[%c0_9, %c0_10] : memref<1x128xf32, #tpu.memory_space<vmem>>, vector<1x128xf32>
    %11 = vector.broadcast %10 : vector<1x128xf32> to vector<16x128xf32>
    %12 = arith.addf %9, %11 : vector<16x128xf32>
    %13 = vector.extract_strided_slice %12 {offsets = [0, 0], sizes = [16, 1], strides = [1, 1]} : vector<16x128xf32> to vector<16x1xf32>
    %c0_11 = arith.constant 0 : index
    %c0_12 = arith.constant 0 : index
    %14 = vector.load %arg6[%c0_11, %c0_12] : memref<16x1xf32, #tpu.memory_space<vmem>>, vector<16x1xf32>
    tpu.vector_store %arg6[%c0_11, %c0_12], %13 {strides = array<i32>} : memref<16x1xf32, #tpu.memory_space<vmem>>, vector<16x1xf32>,
    return
  }
  func.func @transform_0(%arg0: i32) -> (i32, i32) {
    %c0_i32 = arith.constant 0 : i32
    %c0_i32_0 = arith.constant 0 : i32
    return %arg0, %c0_i32 : i32, i32
  }
  func.func @transform_1(%arg0: i32) -> (i32, i32) {
    %c0_i32 = arith.constant 0 : i32
    %c0_i32_0 = arith.constant 0 : i32
    %c0_i32_1 = arith.constant 0 : i32
    return %c0_i32, %c0_i32_0 : i32, i32
  }
  func.func @transform_2(%arg0: i32) -> (i32, i32) {
    %c0_i32 = arith.constant 0 : i32
    %c0_i32_0 = arith.constant 0 : i32
    %c0_i32_1 = arith.constant 0 : i32
    return %c0_i32, %c0_i32_0 : i32, i32
  }
  func.func @transform_3(%arg0: i32) -> (i32, i32) {
    %c0_i32 = arith.constant 0 : i32
    %c0_i32_0 = arith.constant 0 : i32
    %c0_i32_1 = arith.constant 0 : i32
    return %c0_i32, %c0_i32_0 : i32, i32
  }
  func.func @transform_4(%arg0: i32) -> (i32, i32) {
    %c0_i32 = arith.constant 0 : i32
    %c0_i32_0 = arith.constant 0 : i32
    %c0_i32_1 = arith.constant 0 : i32
    return %c0_i32, %c0_i32_0 : i32, i32
  }
  func.func @transform_5(%arg0: i32) -> (i32, i32) {
    %c0_i32 = arith.constant 0 : i32
    %c0_i32_0 = arith.constant 0 : i32
    return %arg0, %c0_i32 : i32, i32
  }
}

</mosaic_0001>

<bundles_post_ra>
// kernel: tpu_custom_call.1
= control target key start
LH: loop header
LB: loop body
LE: loop exit
PB: predicated region body
PF: predicated region fallthrough
CT: control target
= control target key end

     0   :  { %10 = vsyncpa [#allocation3], 0  ;;  %s466_s0 = inlined_call_operand.hbm [shape: f32[16,32], index: 0, kind: input, shape index: {}]   ;;  %s467_s1 = inlined_call_operand.hbm [shape: f32[32,128], index: 1, kind: input, shape index: {}]   ;;  %s468_s2 = inlined_call_operand.vmem [shape: f32[1,128], index: 2, kind: input, shape index: {}]   ;;  %s469_s3 = inlined_call_operand.hbm [shape: f32[128,128], index: 3, kind: input, shape index: {}]   ;;  %s470_s4 = inlined_call_operand.vmem [shape: f32[1,128], index: 4, kind: input, shape index: {}]   ;;  %s471_s5 = inlined_call_operand.vmem [shape: f32[16,1], index: 5, kind: output, shape index: {}]  }
   0x1   :  { %11 = vsyncpa [#allocation5], 0  ;;  %s408_s18 = smov [#allocation4]   ;;  %s409_s20 = smov [#allocation2]  }
   0x2   :  { %s29_s19 = sshll.u32 %s408_s18, 4  ;;  %s17_s21 = sshll.u32 %s409_s20, 4  ;;  %s30_s19 = int_to_ptr.vmem [resolvable:$true] %s29_s19  ;;  %s18_s21 = int_to_ptr.vmem [resolvable:$true] %s17_s21 }
   0x3   :  { %s352_s22 = scalar_lea.vmem %s30_s19, 512  ;;  %p357_p1 = scmp.lt.s32.totalorder %s30_s19, %s30_s19 }
   0x4   :  { %p353_p0 = scmp.ne.s32.totalorder %s30_s19, %s352_s22  ;;  %p358_p2 = scmp.lt.s32.totalorder %s352_s22, %s352_s22 }
   0x6   :  { %p359_p3 = por %p358_p2, %p357_p1 }
   0x8   :  { %p360_p4 = pnand %p359_p3, %p353_p0 }
   0xa   :  { %363 = shalt.err (!%p360_p4)
}
   0xb   :  { %s410_s23 = smov 128   ;;  %s411_s24 = smov 8  }
   0xc   :  { %35 = dma.hbm_to_vmem [thread:$0]  %s467_s1, 512, %s30_s19, [#allocation5], %s410_s23, %s410_s23, %s411_s24  }
   0xd   :  { %s372_s27 = scalar_lea.vmem %s18_s21, 256  ;;  %p377_p6 = scmp.lt.s32.totalorder %s18_s21, %s18_s21 }
   0xe   :  { %p373_p5 = scmp.ne.s32.totalorder %s18_s21, %s372_s27  ;;  %p378_p7 = scmp.lt.s32.totalorder %s372_s27, %s372_s27 }
  0x10   :  { %p379_p8 = por %p378_p7, %p377_p6 }
  0x12   :  { %p380_p9 = pnand %p379_p8, %p373_p5 }
  0x14   :  { %383 = shalt.err (!%p380_p9)
}
  0x15   :  { %23 = dma.hbm_to_vmem [thread:$0]  %s466_s0, 256, %s18_s21, [#allocation3], %s410_s23, %s410_s23, %s411_s24  }
  0x16   :  { %s412_s30 = smov [#allocation6]  }
  0x17   :  { %s43_s6 = sshll.u32 %s412_s30, 4  ;;  %s44_s6 = int_to_ptr.vmem [resolvable:$true] %s43_s6 }
  0x18   :  { %s392_s7 = scalar_lea.vmem %s44_s6, 2048  ;;  %p397_p11 = scmp.lt.s32.totalorder %s44_s6, %s44_s6 }
  0x19   :  { %p393_p10 = scmp.ne.s32.totalorder %s44_s6, %s392_s7  ;;  %p398_p12 = scmp.lt.s32.totalorder %s392_s7, %s392_s7 }
  0x1b   :  { %p399_p13 = por %p398_p12, %p397_p11 }
  0x1d   :  { %p400_p0 = pnand %p399_p13, %p393_p10 }
  0x1f   :  { %403 = shalt.err (!%p400_p0)
}
  0x20   :  { %49 = dma.hbm_to_vmem [thread:$0]  %s469_s3, 2048, %s44_s6, [#allocation5], %s410_s23, %s410_s23, %s411_s24  }
  0x21   :  { %404 = dma.done.wait [#allocation3], 256  }
  0x22   :  { %405 = vsyncadd [#allocation3], 4294967040 }
  0x23   :  { %406 = dma.done.wait [#allocation5], 2560  }
  0x24   :  { %407 = vsyncadd [#allocation5], 4294964736  ;;  %vm74_vm0 = vcmask 261120   ;;  %v66_v0 = vld [vmem:[#allocation4 + $0x18] sm:$0xff]  ;;  %v65_v1 = vld [vmem:[#allocation4 + $0x10] sm:$0xff]  ;;  %vm256_vm1 = vcmask 7168  }
  0x25   :  { %293 = vmatprep.subr.mxu0 %v66_v0  ;;  %v61_v2 = vld [vmem:[#allocation2] sm:$0xff]  ;;  %v64_v3 = vld [vmem:[#allocation4 + $0x8] sm:$0xff]  ;;  %v173_v4 = vld [vmem:[#allocation6 + $0x78] sm:$0xff] }
  0x26   :  { %294 = vmatpush3.msra.mxu0 %v66_v0  ;;  %301 = vmatprep.mubr.msk.f32.mxu0 %vm74_vm0, %v61_v2  ;;  %v172_v5 = vld [vmem:[#allocation6 + $0x70] sm:$0xff]  ;;  %v63_v6 = vld [vmem:[#allocation4] sm:$0xff]  ;;  %v171_v7 = vld [vmem:[#allocation6 + $0x68] sm:$0xff] }
  0x27   :  { %295 = vmatprep.subr.mxu0 %v65_v1  ;;  %304 = vmatprep.subr.mxu1 %v173_v4  ;;  %v62_v8 = vld [vmem:[#allocation2 + $0x8] sm:$0xff]  ;;  %v170_v9 = vld [vmem:[#allocation6 + $0x60] sm:$0xff]  ;;  %v168_v11 = vld [vmem:[#allocation6 + $0x50] sm:$0xff] }
  0x28   :  { %296 = vmatpush3.msra.mxu0 %v65_v1  ;;  %305 = vmatpush3.msra.mxu1 %v173_v4  ;;  %v169_v10 = vld [vmem:[#allocation6 + $0x58] sm:$0xff]  ;;  %v167_v12 = vld [vmem:[#allocation6 + $0x48] sm:$0xff]  ;;  %v166_v13 = vld [vmem:[#allocation6 + $0x40] sm:$0xff] }
  0x29   :  { %297 = vmatprep.subr.mxu0 %v64_v3  ;;  %306 = vmatprep.subr.mxu1 %v172_v5  ;;  %v165_v14 = vld [vmem:[#allocation6 + $0x38] sm:$0xff]  ;;  %v164_v15 = vld [vmem:[#allocation6 + $0x30] sm:$0xff]  ;;  %v163_v16 = vld [vmem:[#allocation6 + $0x28] sm:$0xff] }
  0x2a   :  { %298 = vmatpush3.msra.mxu0 %v64_v3  ;;  %307 = vmatpush3.msra.mxu1 %v172_v5  ;;  %v162_v17 = vld [vmem:[#allocation6 + $0x20] sm:$0xff]  ;;  %v161_v18 = vld [vmem:[#allocation6 + $0x18] sm:$0xff]  ;;  %v160_v19 = vld [vmem:[#allocation6 + $0x10] sm:$0xff] }
  0x2b   :  { %299 = vmatprep.subr.mxu0 %v63_v6  ;;  %308 = vmatprep.subr.mxu1 %v171_v7  ;;  %v159_v20 = vld [vmem:[#allocation6 + $0x8] sm:$0xff]  ;;  %v158_v21 = vld [vmem:[#allocation6] sm:$0xff]  ;;  %v265_v22 = vld [vmem:[%s468_s2] ss:$0 sm:$0xff] }
  0x2c   :  { %300 = vmatpush3.msra.mxu0 %v63_v6  ;;  %309 = vmatpush3.msra.mxu1 %v171_v7  ;;  %v268_v29 = vld [vmem:[%s470_s4] ss:$0 sm:$0xff] }
  0x2d   :  { %302 = vmatmul.mubr.msk.f32.vlgmr.msra.gmra.mxu0 %vm74_vm0, %v62_v8  ;;  %310 = vmatprep.subr.mxu1 %v170_v9 }
  0x2e   :  { %311 = vmatpush3.msra.mxu1 %v170_v9 }
  0x2f   :  { %312 = vmatprep.subr.mxu1 %v169_v10 }
  0x30   :  { %313 = vmatpush3.msra.mxu1 %v169_v10 }
  0x31   :  { %314 = vmatprep.subr.mxu1 %v168_v11 }
  0x32   :  { %315 = vmatpush3.msra.mxu1 %v168_v11 }
  0x33   :  { %316 = vmatprep.subr.mxu1 %v167_v12 }
  0x34   :  { %317 = vmatpush3.msra.mxu1 %v167_v12 }
  0x35   :  { %318 = vmatprep.subr.mxu1 %v166_v13 }
  0x36   :  { %319 = vmatpush3.msra.mxu1 %v166_v13 }
  0x37   :  { %320 = vmatprep.subr.mxu1 %v165_v14 }
  0x38   :  { %321 = vmatpush3.msra.mxu1 %v165_v14 }
  0x39   :  { %322 = vmatprep.subr.mxu1 %v164_v15 }
  0x3a   :  { %323 = vmatpush3.msra.mxu1 %v164_v15 }
  0x3b   :  { %324 = vmatprep.subr.mxu1 %v163_v16 }
  0x3c   :  { %325 = vmatpush3.msra.mxu1 %v163_v16 }
  0x3d   :  { %326 = vmatprep.subr.mxu1 %v162_v17 }
  0x3e   :  { %327 = vmatpush3.msra.mxu1 %v162_v17 }
  0x3f   :  { %328 = vmatprep.subr.mxu1 %v161_v18 }
  0x40   :  { %329 = vmatpush3.msra.mxu1 %v161_v18 }
  0x41   :  { %330 = vmatprep.subr.mxu1 %v160_v19 }
  0x42   :  { %331 = vmatpush3.msra.mxu1 %v160_v19 }
  0x43   :  { %332 = vmatprep.subr.mxu1 %v159_v20 }
  0x44   :  { %333 = vmatpush3.msra.mxu1 %v159_v20 }
  0x45   :  { %334 = vmatprep.subr.mxu1 %v158_v21 }
  0x46   :  { %335 = vmatpush3.msra.mxu1 %v158_v21 }
  0xed   :  { %v303_v23 = vpop.f32.mrf.mxu0 }
  0xee   :  { %v153_v24 = vadd.f32 %v303_v23, %v265_v22 }
  0xef   :  { %v147_v25 = vpop.f32.mrf.mxu0 }
  0xf0   :  { %v148_v26 = vadd.f32 %v265_v22, %v147_v25  ;;  %v157_v28 = vmax.f32 %v153_v24, 0.0 }
  0xf2   :  { %v156_v27 = vmax.f32 %v148_v26, 0.0 }
  0xf4   :  { %336 = vmatprep.mubr.f32.mxu1 %v156_v27 }
  0xf5   :  { %337 = vmatmul.mubr.f32.vlgmr.msra.gmra.mxu1 %v157_v28 }
 0x1b5   :  { %v338_v30 = vpop.f32.mrf.mxu1 }
 0x1b6   :  { %v253_v31 = vadd.f32 %v338_v30, %v268_v29 }
 0x1b7   :  { %v247_v32 = vpop.f32.mrf.mxu1 }
 0x1b8   :  { %258 = vst.msk [vmem:[%s471_s5 + $0x8] sm:$0xff] %vm256_vm1, %v253_v31  ;;  %v248_v33 = vadd.f32 %v268_v29, %v247_v32 }
 0x1ba   :  { %257 = vst.msk [vmem:[%s471_s5] sm:$0xff] %vm256_vm1, %v248_v33 }
 0x1bb   :  { %263 = vsyncpa [#allocation3], 1 }
 0x1bc   :  { %264 = vsyncpa [#allocation5], 1 }

</bundles_post_ra>
